<compile_context>
chip_gen: v5e
topology: v5e:2x2
jax: 0.10.0
libtpu: 0.0.40
codegen_flags: <defaults>
</compile_context>

<pallas_src>
import functools

import jax
import jax.numpy as jnp
from jax.experimental import pallas as pl
from jax.experimental.pallas import tpu as pltpu


# ----------------------------------------------------------------------------
# Kernel 1: pointwise conv (1x1) + folded BatchNorm + SiLU, as a tiled matmul
# ----------------------------------------------------------------------------
def _pw_conv_bn_silu_kernel(x_ref, w_ref, scale_ref, bias_ref, o_ref):
    x = x_ref[...].astype(jnp.bfloat16)                       # bf16 MXU operand
    w = w_ref[...].astype(jnp.bfloat16)
    y = jnp.dot(x, w, preferred_element_type=jnp.float32)     # f32 accumulate
    y = y * scale_ref[...] + bias_ref[...]                     # folded BN (f32)
    y = y * jax.nn.sigmoid(y)                                  # SiLU (f32)
    o_ref[...] = y.astype(o_ref.dtype)


def pointwise_conv_bn_silu(x2d, w, scale, bias, *, tm=256,
                           out_dtype=jnp.float32):
    """x2d: (M, Cin) rows x channels; w: (Cin, Cout) bf16; scale/bias: (1, Cout)."""
    M, cin = x2d.shape
    cout = w.shape[1]
    mp = pl.cdiv(M, tm) * tm
    if mp != M:
        # Pad rows (never collapse to a single grid step / giant VMEM block).
        x2d = jnp.pad(x2d, ((0, mp - M), (0, 0)))
    out = pl.pallas_call(
        _pw_conv_bn_silu_kernel,
        out_shape=jax.ShapeDtypeStruct((mp, cout), out_dtype),
        grid=(mp // tm,),
        in_specs=[
            pl.BlockSpec((tm, cin), lambda i: (i, 0)),
            pl.BlockSpec((cin, cout), lambda i: (0, 0)),
            pl.BlockSpec((1, cout), lambda i: (0, 0)),
            pl.BlockSpec((1, cout), lambda i: (0, 0)),
        ],
        out_specs=pl.BlockSpec((tm, cout), lambda i: (i, 0)),
        compiler_params=pltpu.CompilerParams(
            dimension_semantics=("parallel",),
            vmem_limit_bytes=32 * 1024 * 1024),
    )(x2d, w, scale, bias)
    return out[:M] if mp != M else out


# ----------------------------------------------------------------------------
# Kernel 2: fused  [x, pool(x), pool^2(x), pool^3(x)]  for k x k / s1 / p=k//2
# max-pool, written directly as the concatenated (N, H, W, 4, C1) output.
# ----------------------------------------------------------------------------
def _fused_spp_pool_kernel(x_ref, o_ref, *, k):
    r = k // 2
    xin = x_ref[0]                                   # (H, W, Cblk), storage dtype
    x = xin.astype(jnp.float32)
    H, W = x.shape[0], x.shape[1]
    neg_inf = jnp.float32(-jnp.inf)

    # --- W axis (sublane): roll + mask (halo handled by masking, no pads). ---
    w_idx = jax.lax.broadcasted_iota(jnp.int32, x.shape, 1)
    shifts = [s for s in range(1, r + 1)] + [W - s for s in range(1, r + 1)]
    # Mask out wrapped-around elements; derived from the rolled iota so it is
    # independent of the roll sign convention.
    w_masks = [jnp.abs(pltpu.roll(w_idx, shift=s, axis=1) - w_idx) <= r
               for s in shifts]

    def pool_w(v):
        acc = v
        for s, m in zip(shifts, w_masks):
            acc = jnp.maximum(acc,
                              jnp.where(m, pltpu.roll(v, shift=s, axis=1),
                                        neg_inf))
        return acc

    # --- H axis (leading, untiled dim): cheap slice + concat with -inf. ---
    def pool_h(v):
        acc = v
        for s in range(1, r + 1):
            pad = jnp.full((s, W, v.shape[2]), neg_inf, dtype=jnp.float32)
            fwd = jnp.concatenate([v[s:], pad], axis=0)        # v[i + s]
            bwd = jnp.concatenate([pad, v[:H - s]], axis=0)    # v[i - s]
            acc = jnp.maximum(acc, jnp.maximum(fwd, bwd))
        return acc

    def pool(v):
        return pool_h(pool_w(v))

    y = pool(x)
    z = pool(y)
    w4 = pool(z)

    o_ref[0, :, :, 0, :] = xin
    o_ref[0, :, :, 1, :] = y.astype(o_ref.dtype)
    o_ref[0, :, :, 2, :] = z.astype(o_ref.dtype)
    o_ref[0, :, :, 3, :] = w4.astype(o_ref.dtype)


def fused_spp_pool_concat(x1_nhwc, k=5):
    """x1: (N, H, W, C1) -> (N, H, W, 4, C1) = concat[x1, y, z, w] (pool chain)."""
    N, H, W, C1 = x1_nhwc.shape
    r = k // 2
    assert H > 2 * r and W > 2 * r, "spatial dims too small for this pool kernel"
    cblk = 128 if C1 % 128 == 0 else C1
    kern = functools.partial(_fused_spp_pool_kernel, k=k)
    return pl.pallas_call(
        kern,
        out_shape=jax.ShapeDtypeStruct((N, H, W, 4, C1), x1_nhwc.dtype),
        grid=(N, C1 // cblk),
        in_specs=[pl.BlockSpec((1, H, W, cblk), lambda n, c: (n, 0, 0, c))],
        out_specs=pl.BlockSpec((1, H, W, 4, cblk),
                               lambda n, c: (n, 0, 0, 0, c)),
        compiler_params=pltpu.CompilerParams(
            dimension_semantics=("parallel", "parallel")),
    )(x1_nhwc)


# ----------------------------------------------------------------------------
# SPP module (parameters + forward)
# ----------------------------------------------------------------------------
def _fold_bn(gamma, beta, mean, var, eps=1e-3):
    scale = gamma / jnp.sqrt(var + eps)
    bias = beta - mean * scale
    return scale[None, :].astype(jnp.float32), bias[None, :].astype(jnp.float32)


def make_spp_params(key, in_ch, out_ch):
    """Deterministic synthetic parameters (eval-mode BatchNorm folded)."""
    c1 = in_ch // 2
    c2_in = 2 * in_ch  # == 4 * (in_ch // 2)
    ks = jax.random.split(key, 10)

    # conv1: 1x1 conv (in_ch -> in_ch//2), stored (Cin, Cout) in bf16 for MXU
    w1 = 0.2 * jax.random.normal(ks[0], (in_ch, c1), jnp.float32)
    g1 = 1.0 + 0.1 * jax.random.normal(ks[1], (c1,), jnp.float32)
    b1 = 0.1 * jax.random.normal(ks[2], (c1,), jnp.float32)
    m1 = 0.05 * jax.random.normal(ks[3], (c1,), jnp.float32)
    v1 = jnp.abs(1.0 + 0.1 * jax.random.normal(ks[4], (c1,), jnp.float32))
    s1, bb1 = _fold_bn(g1, b1, m1, v1)

    # conv2: 1x1 conv (2*in_ch -> out_ch)
    w2 = 0.2 * jax.random.normal(ks[5], (c2_in, out_ch), jnp.float32)
    g2 = 1.0 + 0.1 * jax.random.normal(ks[6], (out_ch,), jnp.float32)
    b2 = 0.1 * jax.random.normal(ks[7], (out_ch,), jnp.float32)
    m2 = 0.05 * jax.random.normal(ks[8], (out_ch,), jnp.float32)
    v2 = jnp.abs(1.0 + 0.1 * jax.random.normal(ks[9], (out_ch,), jnp.float32))
    s2, bb2 = _fold_bn(g2, b2, m2, v2)

    return {"w1": w1.astype(jnp.bfloat16), "s1": s1, "b1": bb1,
            "w2": w2.astype(jnp.bfloat16), "s2": s2, "b2": bb2}


def spp_forward(x_nchw, params, k=5):
    """x_nchw: (N, in_ch, H, W) -> (N, out_ch, H, W)  (matches PyTorch SPP)."""
    N, Cin, H, W = x_nchw.shape
    # NOTE: layout change kept wrapper-side; folding it into the conv
    # BlockSpecs is a further optimization.
    x = jnp.transpose(x_nchw, (0, 2, 3, 1)).astype(jnp.float32)   # NHWC
    M = N * H * W

    # conv1 (1x1 + BN + SiLU) -> x1 stored bf16
    x1 = pointwise_conv_bn_silu(x.reshape(M, Cin),
                                params["w1"], params["s1"], params["b1"],
                                out_dtype=jnp.bfloat16)
    C1 = x1.shape[1]
    x1 = x1.reshape(N, H, W, C1)

    # fused pool chain + concat: (N, H, W, 4, C1), bf16
    cat = fused_spp_pool_concat(x1, k)
    cat2d = cat.reshape(M, 4 * C1)                 # free reshape (contiguous)

    # conv2 (1x1 + BN + SiLU) -> f32 output
    out = pointwise_conv_bn_silu(cat2d,
                                 params["w2"], params["s2"], params["b2"],
                                 out_dtype=jnp.float32)
    out = out.reshape(N, H, W, -1)
    return jnp.transpose(out, (0, 3, 1, 2))        # back to NCHW


# ----------------------------------------------------------------------------
# Pure-JAX reference (mirrors the kernels' bf16 storage / MXU policy)
# ----------------------------------------------------------------------------
def _ref_pw(x2d, w, s, b, out_dtype):
    y = jnp.dot(x2d.astype(jnp.bfloat16), w.astype(jnp.bfloat16),
                preferred_element_type=jnp.float32)
    y = y * s + b
    y = y * jax.nn.sigmoid(y)
    return y.astype(out_dtype)


def _ref_pool(x_nhwc, k=5):
    p = k // 2
    return jax.lax.reduce_window(
        x_nhwc, -jnp.inf, jax.lax.max,
        window_dimensions=(1, k, k, 1), window_strides=(1, 1, 1, 1),
        padding=((0, 0), (p, p), (p, p), (0, 0)))


def spp_reference(x_nchw, params, k=5):
    N, Cin, H, W = x_nchw.shape
    x = jnp.transpose(x_nchw, (0, 2, 3, 1)).astype(jnp.float32)
    M = N * H * W
    x1 = _ref_pw(x.reshape(M, Cin), params["w1"], params["s1"], params["b1"],
                 jnp.bfloat16)
    x1 = x1.reshape(N, H, W, -1).astype(jnp.float32)   # bf16 values, exact in f32
    y = _ref_pool(x1, k)
    z = _ref_pool(y, k)
    w_ = _ref_pool(z, k)
    cat = jnp.concatenate([x1, y, z, w_], axis=-1).astype(jnp.bfloat16)
    out = _ref_pw(cat.reshape(M, -1), params["w2"], params["s2"], params["b2"],
                  jnp.float32)
    return jnp.transpose(out.reshape(N, H, W, -1), (0, 3, 1, 2))


if __name__ == "__main__":
    key = jax.random.PRNGKey(0)
    k_x, k_p = jax.random.split(key)

    N, in_ch, H, W = 2, 4, 16, 16
    out_ch = 8

    x = jax.random.normal(k_x, (N, in_ch, H, W), jnp.float32)
    params = make_spp_params(k_p, in_ch, out_ch)

    out = jax.block_until_ready(spp_forward(x, params))
    ref = jax.block_until_ready(spp_reference(x, params))

    assert out.shape == (N, out_ch, H, W), out.shape
    max_err = float(jnp.max(jnp.abs(out - ref)))
    assert max_err < 1e-2, max_err

    print("KERNEL_OK")
</pallas_src>

<mosaic_0001>
module attributes {stable_mosaic.version = 11 : i64} {
  func.func @_pw_conv_bn_silu_kernel(%arg0: i32, %arg1: memref<256x4xf32, #tpu.memory_space<vmem>>, %arg2: memref<4x2xbf16, #tpu.memory_space<vmem>>, %arg3: memref<1x2xf32, #tpu.memory_space<vmem>>, %arg4: memref<1x2xf32, #tpu.memory_space<vmem>>, %arg5: memref<256x2xbf16, #tpu.memory_space<vmem>>) attributes {dimension_semantics = [#tpu.dimension_semantics<parallel>], iteration_bounds = array<i64: 2>, scalar_prefetch = 0 : i64, scratch_operands = 0 : i64, tpu.core_type = #tpu.core_type<tc>, window_params = [{transform_indices = @transform_0, window_bounds = array<i64: 256, 4>}, {pipeline_mode = #tpu.pipeline_mode<synchronous>, transform_indices = @transform_1, window_bounds = array<i64: 4, 2>}, {pipeline_mode = #tpu.pipeline_mode<synchronous>, transform_indices = @transform_2, window_bounds = array<i64: 1, 2>}, {pipeline_mode = #tpu.pipeline_mode<synchronous>, transform_indices = @transform_3, window_bounds = array<i64: 1, 2>}, {transform_indices = @transform_4, window_bounds = array<i64: 256, 2>}]} {
    %c0 = arith.constant 0 : index
    %c0_0 = arith.constant 0 : index
    %0 = vector.load %arg1[%c0, %c0_0] : memref<256x4xf32, #tpu.memory_space<vmem>>, vector<256x4xf32>
    %1 = arith.truncf %0 : vector<256x4xf32> to vector<256x4xbf16>
    %c0_1 = arith.constant 0 : index
    %c0_2 = arith.constant 0 : index
    %2 = vector.load %arg2[%c0_1, %c0_2] : memref<4x2xbf16, #tpu.memory_space<vmem>>, vector<4x2xbf16>
    %cst = arith.constant dense<0.000000e+00> : vector<256x2xf32>
    %3 = tpu.matmul %1, %2, %cst {dimension_numbers = #tpu.dot_dimension_numbers<[1], [0], [0], [1], [0, 0, 1, 1], [], []>} : vector<256x4xbf16>, vector<4x2xbf16>, vector<256x2xf32> -> vector<256x2xf32>
    %c0_3 = arith.constant 0 : index
    %c0_4 = arith.constant 0 : index
    %4 = vector.load %arg3[%c0_3, %c0_4] : memref<1x2xf32, #tpu.memory_space<vmem>>, vector<1x2xf32>
    %5 = vector.broadcast %4 : vector<1x2xf32> to vector<256x2xf32>
    %6 = arith.mulf %3, %5 : vector<256x2xf32>
    %c0_5 = arith.constant 0 : index
    %c0_6 = arith.constant 0 : index
    %7 = vector.load %arg4[%c0_5, %c0_6] : memref<1x2xf32, #tpu.memory_space<vmem>>, vector<1x2xf32>
    %8 = vector.broadcast %7 : vector<1x2xf32> to vector<256x2xf32>
    %9 = arith.addf %6, %8 : vector<256x2xf32>
    %10 = arith.negf %9 : vector<256x2xf32>
    %11 = math.exp %10 : vector<256x2xf32>
    %cst_7 = arith.constant 1.000000e+00 : f32
    %12 = vector.broadcast %cst_7 : f32 to vector<256x2xf32>
    %13 = arith.addf %12, %11 : vector<256x2xf32>
    %14 = arith.divf %12, %13 : vector<256x2xf32>
    %15 = arith.mulf %9, %14 : vector<256x2xf32>
    %16 = arith.truncf %15 : vector<256x2xf32> to vector<256x2xbf16>
    %c0_8 = arith.constant 0 : index
    %c0_9 = arith.constant 0 : index
    %17 = vector.load %arg5[%c0_8, %c0_9] : memref<256x2xbf16, #tpu.memory_space<vmem>>, vector<256x2xbf16>
    tpu.vector_store %arg5[%c0_8, %c0_9], %16 {strides = array<i32>} : memref<256x2xbf16, #tpu.memory_space<vmem>>, vector<256x2xbf16>,
    return
  }
  func.func @transform_0(%arg0: i32) -> (i32, i32) {
    %c0_i32 = arith.constant 0 : i32
    %c0_i32_0 = arith.constant 0 : i32
    return %arg0, %c0_i32 : i32, i32
  }
  func.func @transform_1(%arg0: i32) -> (i32, i32) {
    %c0_i32 = arith.constant 0 : i32
    %c0_i32_0 = arith.constant 0 : i32
    %c0_i32_1 = arith.constant 0 : i32
    return %c0_i32, %c0_i32_0 : i32, i32
  }
  func.func @transform_2(%arg0: i32) -> (i32, i32) {
    %c0_i32 = arith.constant 0 : i32
    %c0_i32_0 = arith.constant 0 : i32
    %c0_i32_1 = arith.constant 0 : i32
    return %c0_i32, %c0_i32_0 : i32, i32
  }
  func.func @transform_3(%arg0: i32) -> (i32, i32) {
    %c0_i32 = arith.constant 0 : i32
    %c0_i32_0 = arith.constant 0 : i32
    %c0_i32_1 = arith.constant 0 : i32
    return %c0_i32, %c0_i32_0 : i32, i32
  }
  func.func @transform_4(%arg0: i32) -> (i32, i32) {
    %c0_i32 = arith.constant 0 : i32
    %c0_i32_0 = arith.constant 0 : i32
    return %arg0, %c0_i32 : i32, i32
  }
}

</mosaic_0001>

<bundles_post_ra>
// kernel: tpu_custom_call.1
= control target key start
LH: loop header
LB: loop body
LE: loop exit
PB: predicated region body
PF: predicated region fallthrough
CT: control target
= control target key end

     0   :  { %s1461_s15 = smov 0   ;;  %s2237_s0 = inlined_call_operand.vmem [shape: f32[512,4], index: 0, kind: input, shape index: {}]   ;;  %s2238_s1 = inlined_call_operand.vmem [shape: bf16[4,2], index: 1, kind: input, shape index: {}]   ;;  %s2239_s2 = inlined_call_operand.vmem [shape: f32[1,2], index: 2, kind: input, shape index: {}]   ;;  %s2240_s3 = inlined_call_operand.vmem [shape: f32[1,2], index: 3, kind: input, shape index: {}]   ;;  %s2241_s4 = inlined_call_operand.vmem [shape: bf16[512,2], index: 4, kind: output, shape index: {}]  }
   0x1 LB: > { %s1226_s16 = sadd.s32 4294967295, %s1434_s15   ;;  %p1230_p0 = scmp.ge.s32.totalorder %s1434_s15, 1  ;;  %s1434_s15 = sphi %s1461_s15, %s14_s15  }
   0x2   : > { %p163_p1 = scmp.lt.s32.totalorder %s1434_s15, 3 }
   0x4   : > { %p164_p2 = pnand %p1230_p0, %p163_p1 }
   0x5   : > { %s1231_s19 = sshll.u32 (!%p164_p2), %s1226_s16, 5 }
   0x6   : > { %167 = sbr.rel (%p164_p2) target bundleno = 321 (0x141), region = 36  ;;  %p190_p3 = scmp.lt.s32.totalorder (!%p164_p2), %s1231_s19, 63 }
   0xb   : > { %v250_v0 = vld [vmem:[%s2238_s1] sm:$0x3]  ;;  %vm300_vm0 = vcmask 1041408   ;;  %s2289_s19 = smov (!%p190_p3, %s1231_s19), 63  ;;  %vm251_vm1 = vcmask 31744   ;;  %vm1137_vm7 = vcmask 11264  }
   0xc   : > { %v302_v1 = vsel %vm300_vm0, %v250_v0, 0  ;;  %s1232_s20 = sshll.u32 %s2289_s19, 3  ;;  %v1531_v50 = vld [vmem:[%s2239_s2] ss:$0 sm:$0xff]  ;;  %s1234_s28 = sshll.u32 %s2289_s19, 2 }
   0xd   : > { %311 = vmatpush.bf16.msra.mxu0 %v302_v1  ;;  %1285 = vmatpush.bf16.msra.mxu1 %v302_v1  ;;  %s1478_s23 = scalar_lea.vmem %s2237_s0, %s1232_s20  ;;  %v1536_v51 = vld [vmem:[%s2240_s3] ss:$0 sm:$0xff]  ;;  %s1652_s5 = scalar_lea.vmem %s2241_s4, %s1234_s28 }
   0xe   : > { %1286 = vmatpush.bf16.msra.mxu2 %v302_v1  ;;  %1287 = vmatpush.bf16.msra.mxu3 %v302_v1  ;;  %v202_v2 = vld [vmem:[%s1478_s23] sm:$0xff]  ;;  %v203_v3 = vld [vmem:[%s1478_s23 + $0x8] sm:$0xff]  ;;  %v204_v14 = vld [vmem:[%s1478_s23 + $0x10] sm:$0xff] }
   0xf   : > { %v210_v4 = vld [vmem:[%s1478_s23 + $0x40] sm:$0xff]  ;;  %v234_v5 = vpack.c.bf16 %v203_v3, %v202_v2  ;;  %v211_v6 = vld [vmem:[%s1478_s23 + $0x48] sm:$0xff]  ;;  %v205_v15 = vld [vmem:[%s1478_s23 + $0x18] sm:$0xff] }
  0x10   : > { %v218_v7 = vld [vmem:[%s1478_s23 + $0x80] sm:$0xff]  ;;  %v219_v8 = vld [vmem:[%s1478_s23 + $0x88] sm:$0xff]  ;;  %v238_v9 = vpack.c.bf16 %v211_v6, %v210_v4  ;;  %v212_v16 = vld [vmem:[%s1478_s23 + $0x50] sm:$0xff]  ;;  %v235_v22 = vpack.c.bf16 %v205_v15, %v204_v14 }
  0x11   : > { %v242_v10 = vpack.c.bf16 %v219_v8, %v218_v7  ;;  %v226_v11 = vld [vmem:[%s1478_s23 + $0xc0] sm:$0xff]  ;;  %v227_v12 = vld [vmem:[%s1478_s23 + $0xc8] sm:$0xff]  ;;  %1235 = vmatmul.msk.bf16.vlgmr.msra.gmra.mxu0 %vm251_vm1, %v234_v5  ;;  %v213_v17 = vld [vmem:[%s1478_s23 + $0x58] sm:$0xff] }
  0x12   : > { %v246_v13 = vpack.c.bf16 %v227_v12, %v226_v11  ;;  %1239 = vmatmul.msk.bf16.vlgmr.msra.gmra.mxu1 %vm251_vm1, %v238_v9  ;;  %v220_v18 = vld [vmem:[%s1478_s23 + $0x90] sm:$0xff]  ;;  %v221_v19 = vld [vmem:[%s1478_s23 + $0x98] sm:$0xff]  ;;  %v239_v23 = vpack.c.bf16 %v213_v17, %v212_v16  ;;  %v206_v26 = vld [vmem:[%s1478_s23 + $0x20] sm:$0xff] }
  0x13   : > { %1243 = vmatmul.msk.bf16.vlgmr.msra.gmra.mxu2 %vm251_vm1, %v242_v10  ;;  %v228_v20 = vld [vmem:[%s1478_s23 + $0xd0] sm:$0xff]  ;;  %v229_v21 = vld [vmem:[%s1478_s23 + $0xd8] sm:$0xff]  ;;  %v243_v24 = vpack.c.bf16 %v221_v19, %v220_v18  ;;  %v207_v27 = vld [vmem:[%s1478_s23 + $0x28] sm:$0xff] }
  0x14   : > { %1247 = vmatmul.msk.bf16.vlgmr.msra.gmra.mxu3 %vm251_vm1, %v246_v13  ;;  %v247_v25 = vpack.c.bf16 %v229_v21, %v228_v20  ;;  %v214_v28 = vld [vmem:[%s1478_s23 + $0x60] sm:$0xff]  ;;  %v215_v29 = vld [vmem:[%s1478_s23 + $0x68] sm:$0xff]  ;;  %v236_v34 = vpack.c.bf16 %v207_v27, %v206_v26  ;;  %v208_v38 = vld [vmem:[%s1478_s23 + $0x30] sm:$0xff] }
  0x15   : > { %v222_v30 = vld [vmem:[%s1478_s23 + $0xa0] sm:$0xff]  ;;  %v223_v31 = vld [vmem:[%s1478_s23 + $0xa8] sm:$0xff]  ;;  %v240_v35 = vpack.c.bf16 %v215_v29, %v214_v28  ;;  %v209_v39 = vld [vmem:[%s1478_s23 + $0x38] sm:$0xff] }
  0x16   : > { %v230_v32 = vld [vmem:[%s1478_s23 + $0xe0] sm:$0xff]  ;;  %v231_v33 = vld [vmem:[%s1478_s23 + $0xe8] sm:$0xff]  ;;  %v244_v36 = vpack.c.bf16 %v223_v31, %v222_v30  ;;  %v216_v40 = vld [vmem:[%s1478_s23 + $0x70] sm:$0xff]  ;;  %v237_v46 = vpack.c.bf16 %v209_v39, %v208_v38 }
  0x17   : > { %v248_v37 = vpack.c.bf16 %v231_v33, %v230_v32  ;;  %v217_v41 = vld [vmem:[%s1478_s23 + $0x78] sm:$0xff]  ;;  %v224_v42 = vld [vmem:[%s1478_s23 + $0xb0] sm:$0xff] }
  0x18   : > { %v225_v43 = vld [vmem:[%s1478_s23 + $0xb8] sm:$0xff]  ;;  %v232_v44 = vld [vmem:[%s1478_s23 + $0xf0] sm:$0xff]  ;;  %v241_v47 = vpack.c.bf16 %v217_v41, %v216_v40 }
  0x19   : > { %v233_v45 = vld [vmem:[%s1478_s23 + $0xf8] sm:$0xff]  ;;  %v245_v48 = vpack.c.bf16 %v225_v43, %v224_v42 }
  0x1a   : > { %v249_v49 = vpack.c.bf16 %v233_v45, %v232_v44 }
  0x21   : > { %1236 = vmatmul.msk.bf16.gmra.mxu0 %vm251_vm1, %v235_v22 }
  0x22   : > { %1240 = vmatmul.msk.bf16.gmra.mxu1 %vm251_vm1, %v239_v23 }
  0x23   : > { %1244 = vmatmul.msk.bf16.gmra.mxu2 %vm251_vm1, %v243_v24 }
  0x24   : > { %1248 = vmatmul.msk.bf16.gmra.mxu3 %vm251_vm1, %v247_v25 }
  0x31   : > { %1237 = vmatmul.msk.bf16.gmra.mxu0 %vm251_vm1, %v236_v34 }
  0x32   : > { %1241 = vmatmul.msk.bf16.gmra.mxu1 %vm251_vm1, %v240_v35 }
  0x33   : > { %1245 = vmatmul.msk.bf16.gmra.mxu2 %vm251_vm1, %v244_v36 }
  0x34   : > { %1249 = vmatmul.msk.bf16.gmra.mxu3 %vm251_vm1, %v248_v37 }
  0x41   : > { %1238 = vmatmul.msk.bf16.gmra.mxu0 %vm251_vm1, %v237_v46 }
  0x42   : > { %1242 = vmatmul.msk.bf16.gmra.mxu1 %vm251_vm1, %v241_v47 }
  0x43   : > { %1246 = vmatmul.msk.bf16.gmra.mxu2 %vm251_vm1, %v245_v48 }
  0x44   : > { %1250 = vmatmul.msk.bf16.gmra.mxu3 %vm251_vm1, %v249_v49 }
  0x8e   : > { %v313_v52 = vpop.f32.mrf.mxu0 }
  0x8f   : > { %v397_v53 = vmul.f32 %v1531_v50, %v313_v52  ;;  %v333_v54 = vpop.f32.mrf.mxu1 }
  0x90   : > { %v405_v55 = vmul.f32 %v1531_v50, %v333_v54 }
  0x91   : > { %v1541_v56 = vadd.f32 %v1536_v51, %v397_v53 }
  0x92   : > { %v1544_v57 = vadd.f32 %v1536_v51, %v405_v55 }
  0x93   : > { %v1251_v58 = vmul.f32 -1.442695, %v1541_v56 }
  0x94   : > { %v1259_v59 = vmul.f32 -1.442695, %v1544_v57 }
  0x95   : > { %1298 = vpow2.f32 %v1251_v58 }
  0x96   : > { %v353_v60 = vpop.f32.mrf.mxu2  ;;  %1300 = vpow2.f32 %v1259_v59  ;;  %v315_v63 = vpop.f32.mrf.mxu0 }
  0x97   : > { %v413_v61 = vmul.f32 %v1531_v50, %v353_v60  ;;  %v373_v62 = vpop.f32.mrf.mxu3  ;;  %v398_v1 = vmul.f32 %v1531_v50, %v315_v63  ;;  %v335_v2 = vpop.f32.mrf.mxu1 }
  0x98   : > { %v421_v0 = vmul.f32 %v1531_v50, %v373_v62  ;;  %v406_v4 = vmul.f32 %v1531_v50, %v335_v2 }
  0x99   : > { %v1552_v3 = vadd.f32 %v1536_v51, %v413_v61  ;;  %v1559_v6 = vadd.f32 %v1536_v51, %v398_v1 }
  0x9a   : > { %v1556_v5 = vadd.f32 %v1536_v51, %v421_v0  ;;  %v1563_v8 = vadd.f32 %v1536_v51, %v406_v4 }
  0x9b   : > { %v1267_v7 = vmul.f32 -1.442695, %v1552_v3  ;;  %v1299_v9 = vpop.eup %1298  ;;  %v1252_v13 = vmul.f32 -1.442695, %v1559_v6 }
  0x9c   : > { %v1275_v10 = vmul.f32 -1.442695, %v1556_v5  ;;  %v1301_v11 = vpop.eup %1300  ;;  %v1566_v12 = vadd.f32 1.0, %v1299_v9  ;;  %v1260_v15 = vmul.f32 -1.442695, %v1563_v8 }
  0x9d   : > { %1302 = vpow2.f32 %v1267_v7  ;;  %v1569_v14 = vadd.f32 1.0, %v1301_v11 }
  0x9e   : > { %1304 = vpow2.f32 %v1275_v10  ;;  %v355_v16 = vpop.f32.mrf.mxu2  ;;  %v318_v19 = vpop.f32.mrf.mxu0  ;;  %v602_v20 = vand.u32 2147483647, %v1566_v12  ;;  %v604_v21 = vand.u32 2147483648, %v1566_v12  ;;  %vm598_vm2 = vweird.f32 %v1566_v12 }
  0x9f   : > { %1306 = vrcp.f32 %v1566_v12  ;;  %v414_v17 = vmul.f32 %v1531_v50, %v355_v16  ;;  %v375_v18 = vpop.f32.mrf.mxu3  ;;  %v338_v22 = vpop.f32.mrf.mxu1  ;;  %v722_v24 = vand.u32 2147483647, %v1569_v14  ;;  %v724_v25 = vand.u32 2147483648, %v1569_v14 }
  0xa0   : > { %1308 = vrcp.f32 %v1569_v14  ;;  %v422_v29 = vmul.f32 %v1531_v50, %v375_v18  ;;  %v399_v30 = vmul.f32 %v1531_v50, %v318_v19  ;;  %vm718_vm3 = vweird.f32 %v1569_v14 }
  0xa1   : > { %1310 = vpow2.f32 %v1252_v13  ;;  %v1580_v26 = vadd.f32 %v1536_v51, %v414_v17  ;;  %v407_v33 = vmul.f32 %v1531_v50, %v338_v22  ;;  %vm1592_vm4 = vcmp.eq.f32.partialorder %v602_v20, 8.507059e+37 }
  0xa2   : > { %1312 = vpow2.f32 %v1260_v15  ;;  %v605_v37 = vor.u32 1.1754944e-38, %v604_v21  ;;  %vm1598_vm5 = vcmp.eq.f32.partialorder %v722_v24, 8.507059e+37  ;;  %v725_v41 = vor.u32 1.1754944e-38, %v724_v25 }
  0xa3   : > { %v1303_v23 = vpop.eup %1302  ;;  %v1268_v42 = vmul.f32 -1.442695, %v1580_v26  ;;  %v1605_v45 = vadd.f32 %v1536_v51, %v422_v29  ;;  %v1608_v46 = vadd.f32 %v1536_v51, %v399_v30  ;;  %v1612_v49 = vadd.f32 %v1536_v51, %v407_v33 }
  0xa4   : > { %v1305_v27 = vpop.eup %1304  ;;  %v1582_v28 = vadd.f32 1.0, %v1303_v23 }
  0xa5   : > { %v1307_v31 = vpop.eup %1306  ;;  %v1588_v32 = vadd.f32 1.0, %v1305_v27  ;;  %v1276_v9 = vmul.f32 -1.442695, %v1605_v45 }
  0xa6   : > { %v1309_v34 = vpop.eup %1308  ;;  %v594_v35 = vmul.f32 %v1307_v31, %v1566_v12  ;;  %1314 = vrcp.f32 %v1582_v28  ;;  %vm599_vm6 = vweird.f32 %v1307_v31  ;;  %v842_v48 = vand.u32 2147483647, %v1582_v28 }
  0xa7   : > { %v1311_v38 = vpop.eup %1310  ;;  %v714_v39 = vmul.f32 %v1309_v34, %v1569_v14  ;;  %1316 = vrcp.f32 %v1588_v32  ;;  %v844_v53 = vand.u32 2147483648, %v1582_v28  ;;  %vm719_vm8 = vweird.f32 %v1309_v34  ;;  %vm600_vm10 = vmor %vm598_vm2, %vm599_vm6 }
  0xa8   : > { %v1313_v43 = vpop.eup %1312  ;;  %v595_v44 = vsub.f32 1.0, %v594_v35  ;;  %v1615_v54 = vadd.f32 1.0, %v1311_v38  ;;  %v962_v59 = vand.u32 2147483647, %v1588_v32  ;;  %1318 = vpow2.f32 %v1268_v42  ;;  %vm720_vm13 = vmor %vm718_vm3, %vm719_vm8 }
  0xa9   : > { %v715_v47 = vsub.f32 1.0, %v714_v39  ;;  %v1617_v55 = vadd.f32 1.0, %v1313_v43  ;;  %vm838_vm9 = vweird.f32 %v1582_v28  ;;  %v964_v62 = vand.u32 2147483648, %v1588_v32  ;;  %v358_v43 = vpop.f32.mrf.mxu2 }
  0xaa   : > { %v596_v52 = vmul.f32 %v1307_v31, %v595_v44  ;;  %1320 = vrcp.f32 %v1615_v54  ;;  %vm1627_vm11 = vcmp.eq.f32.partialorder %v842_v48, 8.507059e+37  ;;  %vm958_vm12 = vweird.f32 %v1588_v32 }
  0xab   : > { %v716_v58 = vmul.f32 %v1309_v34, %v715_v47  ;;  %v845_v7 = vor.u32 1.1754944e-38, %v844_v53  ;;  %1322 = vrcp.f32 %v1617_v55  ;;  %vm1641_vm14 = vcmp.eq.f32.partialorder %v962_v59, 8.507059e+37 }
  0xac   : > { %v1315_v60 = vpop.eup %1314  ;;  %v597_v61 = vadd.f32 %v1307_v31, %v596_v52  ;;  %v965_v17 = vor.u32 1.1754944e-38, %v964_v62  ;;  %v617_v18 = vand.u32 2147483647, %v1615_v54  ;;  %1324 = vpow2.f32 %v1276_v9 }
  0xad   : > { %v717_v63 = vadd.f32 %v1309_v34, %v716_v58  ;;  %v834_v0 = vmul.f32 %v1315_v60, %v1582_v28  ;;  %v1317_v2 = vpop.eup %1316  ;;  %vm839_vm15 = vweird.f32 %v1315_v60  ;;  %vm613_vm2 = vweird.f32 %v1615_v54 }
  0xae   : > { %v601_v4 = vsel %vm600_vm10, %v1307_v31, %v597_v61  ;;  %v954_v13 = vmul.f32 %v1317_v2, %v1588_v32  ;;  %v1319_v19 = vpop.eup %1318  ;;  %vm959_vm0 = vweird.f32 %v1317_v2  ;;  %vm840_vm1 = vmor %vm838_vm9, %vm839_vm15  ;;  %vm1663_vm3 = vcmp.eq.f32.partialorder %v617_v18, 8.507059e+37 }
  0xaf   : > { %v606_v10 = vsel %vm1592_vm4, %v605_v37, %v601_v4  ;;  %v721_v11 = vsel %vm720_vm13, %v1309_v34, %v717_v63  ;;  %v835_v12 = vsub.f32 1.0, %v834_v0  ;;  %v1655_v24 = vadd.f32 1.0, %v1319_v19  ;;  %vm960_vm4 = vmor %vm958_vm12, %vm959_vm0 }
  0xb0   : > { %v1073_v16 = vmul.f32 %v606_v10, %v1541_v56  ;;  %v726_v14 = vsel %vm1598_vm5, %v725_v41, %v721_v11  ;;  %v955_v22 = vsub.f32 1.0, %v954_v13  ;;  %v1321_v23 = vpop.eup %1320  ;;  %v619_v33 = vand.u32 2147483648, %v1615_v54  ;;  %v378_v11 = vpop.f32.mrf.mxu3 }
  0xb1   : > { %v1081_v20 = vmul.f32 %v726_v14, %v1544_v57  ;;  %v836_v21 = vmul.f32 %v1315_v60, %v835_v12  ;;  %v609_v30 = vmul.f32 %v1321_v23, %v1615_v54  ;;  %v1323_v31 = vpop.eup %1322  ;;  %1326 = vrcp.f32 %v1655_v24  ;;  %v320_v12 = vpop.f32.mrf.mxu0 }
  0xb2   : > { %v1105_v56 = vpack.c.bf16 %v1073_v16, %v1073_v16  ;;  %v956_v29 = vmul.f32 %v1317_v2, %v955_v22  ;;  %v729_v37 = vmul.f32 %v1323_v31, %v1617_v55  ;;  %vm614_vm5 = vweird.f32 %v1321_v23  ;;  %v1325_v44 = vpop.eup %1324 }
  0xb3   : > { %v1113_v25 = vpack.c.bf16 %v1081_v20, %v1081_v20  ;;  %v837_v27 = vadd.f32 %v1315_v60, %v836_v21  ;;  %v610_v36 = vsub.f32 1.0, %v609_v30  ;;  %vm733_vm6 = vweird.f32 %v1617_v55  ;;  %vm615_vm9 = vmor %vm613_vm2, %vm614_vm5 }
  0xb4   : > { %1138 = vst.msk [vmem:[%s1652_s5] sm:$0xf] %vm1137_vm7, %v1105_v56  ;;  %v957_v35 = vadd.f32 %v1317_v2, %v956_v29  ;;  %v737_v38 = vand.u32 2147483647, %v1617_v55  ;;  %v730_v42 = vsub.f32 1.0, %v729_v37  ;;  %vm734_vm8 = vweird.f32 %v1323_v31  ;;  %v340_v56 = vpop.f32.mrf.mxu1 }
  0xb5   : > { %1146 = vst.msk [vmem:[%s1652_s5 + $0x20] sm:$0xf] %vm1137_vm7, %v1113_v25  ;;  %v841_v34 = vsel %vm840_vm1, %v1315_v60, %v837_v27  ;;  %v611_v41 = vmul.f32 %v1321_v23, %v610_v36  ;;  %v739_v32 = vand.u32 2147483648, %v1617_v55  ;;  %v1253_v48 = vmul.f32 -1.442695, %v1608_v46  ;;  %vm735_vm10 = vmor %vm733_vm6, %vm734_vm8 }
  0xb6   : > { %v846_v28 = vsel %vm1627_vm11, %v845_v7, %v841_v34  ;;  %v961_v40 = vsel %vm960_vm4, %v1317_v2, %v957_v35  ;;  %v731_v59 = vmul.f32 %v1323_v31, %v730_v42  ;;  %v620_v60 = vor.u32 1.1754944e-38, %v619_v33 }
  0xb7   : > { %v1089_v39 = vmul.f32 %v846_v28, %v1552_v3  ;;  %v966_v47 = vsel %vm1641_vm14, %v965_v17, %v961_v40  ;;  %v612_v58 = vadd.f32 %v1321_v23, %v611_v41  ;;  %v1327_v3 = vpop.eup %1326  ;;  %v1688_v61 = vadd.f32 1.0, %v1325_v44 }
  0xb8   : > { %v1097_v53 = vmul.f32 %v966_v47, %v1556_v5  ;;  %1328 = vpow2.f32 %v1253_v48  ;;  %v1261_v62 = vmul.f32 -1.442695, %v1612_v49  ;;  %v732_v1 = vadd.f32 %v1323_v31, %v731_v59 }
  0xb9   : > { %v1121_v52 = vpack.c.bf16 %v1089_v39, %v1089_v39  ;;  %v616_v0 = vsel %vm615_vm9, %v1321_v23, %v612_v58  ;;  %v849_v5 = vmul.f32 %v1327_v3, %v1655_v24  ;;  %vm738_vm11 = vcmp.eq.f32.partialorder %v737_v38, 8.507059e+37 }
  0xba   : > { %v1129_v63 = vpack.c.bf16 %v1097_v53, %v1097_v53  ;;  %v621_v2 = vsel %vm1663_vm3, %v620_v60, %v616_v0  ;;  %v740_v54 = vor.u32 1.1754944e-38, %v739_v32  ;;  %1330 = vrcp.f32 %v1688_v61 }
  0xbb   : > { %1154 = vst.msk [vmem:[%s1652_s5 + $0x40] sm:$0xf] %vm1137_vm7, %v1121_v52  ;;  %v1074_v4 = vmul.f32 %v621_v2, %v1559_v6  ;;  %v736_v7 = vsel %vm735_vm10, %v1323_v31, %v732_v1  ;;  %v850_v9 = vsub.f32 1.0, %v849_v5  ;;  %v857_v10 = vand.u32 2147483647, %v1655_v24  ;;  %v380_v52 = vpop.f32.mrf.mxu3 }
  0xbc   : > { %1162 = vst.msk [vmem:[%s1652_s5 + $0x60] sm:$0xf] %vm1137_vm7, %v1129_v63  ;;  %v741_v13 = vsel %vm738_vm11, %v740_v54, %v736_v7  ;;  %v859_v15 = vand.u32 2147483648, %v1655_v24  ;;  %1332 = vpow2.f32 %v1261_v62  ;;  %v415_v55 = vmul.f32 %v1531_v50, %v358_v43 }
  0xbd   : > { %v1106_v16 = vpack.c.bf16 %v1074_v4, %v1074_v4  ;;  %v1082_v14 = vmul.f32 %v741_v13, %v1563_v8  ;;  %v851_v17 = vmul.f32 %v1327_v3, %v850_v9  ;;  %vm854_vm12 = vweird.f32 %v1327_v3 }
  0xbe   : > { %v1329_v18 = vpop.eup %1328  ;;  %vm853_vm13 = vweird.f32 %v1655_v24  ;;  %v1709_v6 = vadd.f32 %v1536_v51, %v415_v55  ;;  %v423_v19 = vmul.f32 %v1531_v50, %v378_v11  ;;  %v400_v20 = vmul.f32 %v1531_v50, %v320_v12  ;;  %v360_v24 = vpop.f32.mrf.mxu2 }
  0xbf   : > { %1139 = vst.msk [vmem:[%s1652_s5 + $0x4] sm:$0xf] %vm1137_vm7, %v1106_v16  ;;  %v1114_v21 = vpack.c.bf16 %v1082_v14, %v1082_v14  ;;  %v852_v22 = vadd.f32 %v1327_v3, %v851_v17  ;;  %vm1715_vm14 = vcmp.eq.f32.partialorder %v857_v10, 8.507059e+37  ;;  %v1719_v8 = vadd.f32 1.0, %v1329_v18  ;;  %vm855_vm15 = vmor %vm853_vm13, %vm854_vm12  ;;  %v323_v55 = vpop.f32.mrf.mxu0 }
  0xc0   : > { %v1331_v25 = vpop.eup %1330  ;;  %v860_v27 = vor.u32 1.1754944e-38, %v859_v15  ;;  %v1269_v29 = vmul.f32 -1.442695, %v1709_v6  ;;  %v1723_v30 = vadd.f32 %v1536_v51, %v423_v19  ;;  %v1726_v31 = vadd.f32 %v1536_v51, %v400_v20 }
  0xc1   : > { %1147 = vst.msk [vmem:[%s1652_s5 + $0x24] sm:$0xf] %vm1137_vm7, %v1114_v21  ;;  %v856_v57 = vsel %vm855_vm15, %v1327_v3, %v852_v22  ;;  %v969_v33 = vmul.f32 %v1331_v25, %v1688_v61  ;;  %v977_v34 = vand.u32 2147483647, %v1688_v61  ;;  %1334 = vrcp.f32 %v1719_v8 }
  0xc2   : > { %v1333_v35 = vpop.eup %1332  ;;  %v861_v36 = vsel %vm1715_vm14, %v860_v27, %v856_v57  ;;  %v979_v37 = vand.u32 2147483648, %v1688_v61  ;;  %v408_v28 = vmul.f32 %v1531_v50, %v340_v56  ;;  %v416_v38 = vmul.f32 %v1531_v50, %v360_v24 }
  0xc3   : > { %v1090_v39 = vmul.f32 %v861_v36, %v1580_v26  ;;  %v970_v40 = vsub.f32 1.0, %v969_v33  ;;  %v1739_v41 = vadd.f32 1.0, %v1333_v35  ;;  %1336 = vpow2.f32 %v1269_v29 }
  0xc4   : > { %v632_v42 = vand.u32 2147483647, %v1719_v8  ;;  %v1277_v43 = vmul.f32 -1.442695, %v1723_v30  ;;  %v1254_v44 = vmul.f32 -1.442695, %v1726_v31  ;;  %vm974_vm0 = vweird.f32 %v1331_v25 }
  0xc5   : > { %v1122_v47 = vpack.c.bf16 %v1090_v39, %v1090_v39  ;;  %v971_v32 = vmul.f32 %v1331_v25, %v970_v40  ;;  %1338 = vrcp.f32 %v1739_v41  ;;  %vm973_vm1 = vweird.f32 %v1688_v61 }
  0xc6   : > { %v634_v26 = vand.u32 2147483648, %v1719_v8  ;;  %1340 = vpow2.f32 %v1277_v43  ;;  %v1748_v48 = vadd.f32 %v1536_v51, %v408_v28  ;;  %vm978_vm2 = vcmp.eq.f32.partialorder %v977_v34, 8.507059e+37  ;;  %vm975_vm3 = vmor %vm973_vm1, %vm974_vm0 }
  0xc7   : > { %v1335_v53 = vpop.eup %1334  ;;  %1155 = vst.msk [vmem:[%s1652_s5 + $0x44] sm:$0xf] %vm1137_vm7, %v1122_v47  ;;  %v972_v58 = vadd.f32 %v1331_v25, %v971_v32  ;;  %1342 = vpow2.f32 %v1254_v44  ;;  %v1753_v59 = vadd.f32 %v1536_v51, %v416_v38  ;;  %v980_v3 = vor.u32 1.1754944e-38, %v979_v37 }
  0xc8   : > { %v624_v60 = vmul.f32 %v1335_v53, %v1719_v8  ;;  %vm628_vm4 = vweird.f32 %v1719_v8  ;;  %vm1757_vm5 = vcmp.eq.f32.partialorder %v632_v42, 8.507059e+37  ;;  %v752_v0 = vand.u32 2147483647, %v1739_v41 }
  0xc9   : > { %v1337_v62 = vpop.eup %1336  ;;  %v976_v63 = vsel %vm975_vm3, %v1331_v25, %v972_v58  ;;  %v1262_v1 = vmul.f32 -1.442695, %v1748_v48  ;;  %v424_v5 = vmul.f32 %v1531_v50, %v380_v52  ;;  %v635_v4 = vor.u32 1.1754944e-38, %v634_v26  ;;  %v343_v25 = vpop.f32.mrf.mxu1 }
  0xca   : > { %v981_v2 = vsel %vm978_vm2, %v980_v3, %v976_v63  ;;  %v625_v54 = vsub.f32 1.0, %v624_v60  ;;  %v1764_v7 = vadd.f32 1.0, %v1337_v62  ;;  %vm748_vm6 = vweird.f32 %v1739_v41 }
  0xcb   : > { %v1339_v9 = vpop.eup %1338  ;;  %v1098_v10 = vmul.f32 %v981_v2, %v1605_v45  ;;  %1344 = vpow2.f32 %v1262_v1  ;;  %v1270_v11 = vmul.f32 -1.442695, %v1753_v59  ;;  %vm629_vm8 = vweird.f32 %v1335_v53 }
  0xcc   : > { %v1341_v12 = vpop.eup %1340  ;;  %v626_v13 = vmul.f32 %v1335_v53, %v625_v54  ;;  %v744_v15 = vmul.f32 %v1339_v9, %v1739_v41  ;;  %1346 = vrcp.f32 %v1764_v7  ;;  %vm1771_vm9 = vcmp.eq.f32.partialorder %v752_v0, 8.507059e+37  ;;  %vm630_vm10 = vmor %vm628_vm4, %vm629_vm8 }
  0xcd   : > { %v1343_v16 = vpop.eup %1342  ;;  %v1130_v14 = vpack.c.bf16 %v1098_v10, %v1098_v10  ;;  %v754_v45 = vand.u32 2147483648, %v1739_v41  ;;  %v1777_v18 = vadd.f32 %v1536_v51, %v424_v5  ;;  %v1779_v21 = vadd.f32 1.0, %v1341_v12 }
  0xce   : > { %v627_v19 = vadd.f32 %v1335_v53, %v626_v13  ;;  %v745_v20 = vsub.f32 1.0, %v744_v15  ;;  %v1781_v22 = vadd.f32 1.0, %v1343_v16  ;;  %v872_v23 = vand.u32 2147483647, %v1764_v7 }
  0xcf   : > { %1163 = vst.msk [vmem:[%s1652_s5 + $0x64] sm:$0xf] %vm1137_vm7, %v1130_v14  ;;  %v874_v56 = vand.u32 2147483648, %v1764_v7  ;;  %1348 = vpow2.f32 %v1270_v11  ;;  %v401_v24 = vmul.f32 %v1531_v50, %v323_v55  ;;  %vm749_vm11 = vweird.f32 %v1339_v9 }
  0xd0   : > { %v631_v27 = vsel %vm630_vm10, %v1335_v53, %v627_v19  ;;  %v746_v29 = vmul.f32 %v1339_v9, %v745_v20  ;;  %1350 = vrcp.f32 %v1779_v21  ;;  %v755_v34 = vor.u32 1.1754944e-38, %v754_v45  ;;  %vm750_vm13 = vmor %vm748_vm6, %vm749_vm11 }
  0xd1   : > { %v1345_v57 = vpop.eup %1344  ;;  %v636_v33 = vsel %vm1757_vm5, %v635_v4, %v631_v27  ;;  %1352 = vrcp.f32 %v1781_v22  ;;  %v1278_v8 = vmul.f32 -1.442695, %v1777_v18  ;;  %vm868_vm12 = vweird.f32 %v1764_v7 }
  0xd2   : > { %v1347_v35 = vpop.eup %1346  ;;  %v1075_v36 = vmul.f32 %v636_v33, %v1608_v46  ;;  %v747_v37 = vadd.f32 %v1339_v9, %v746_v29  ;;  %v1798_v28 = vmul.f32 %v1531_v50, %v343_v25  ;;  %vm1803_vm14 = vcmp.eq.f32.partialorder %v872_v23, 8.507059e+37 }
  0xd3   : > { %v864_v38 = vmul.f32 %v1347_v35, %v1764_v7  ;;  %v875_v40 = vor.u32 1.1754944e-38, %v874_v56  ;;  %v992_v42 = vand.u32 2147483647, %v1779_v21  ;;  %v1809_v46 = vadd.f32 %v1536_v51, %v401_v24 }
  0xd4   : > { %v1107_v43 = vpack.c.bf16 %v1075_v36, %v1075_v36  ;;  %v751_v44 = vsel %vm750_vm13, %v1339_v9, %v747_v37  ;;  %v994_v47 = vand.u32 2147483648, %v1779_v21  ;;  %v647_v41 = vand.u32 2147483647, %v1781_v22  ;;  %v383_v37 = vpop.f32.mrf.mxu3 }
  0xd5   : > { %v1349_v32 = vpop.eup %1348  ;;  %v756_v26 = vsel %vm1771_vm9, %v755_v34, %v751_v44  ;;  %v865_v52 = vsub.f32 1.0, %v864_v38  ;;  %vm988_vm15 = vweird.f32 %v1779_v21  ;;  %v1816_v53 = vadd.f32 1.0, %v1345_v57 }
  0xd6   : > { %1354 = vpow2.f32 %v1278_v8  ;;  %v1351_v58 = vpop.eup %1350  ;;  %1140 = vst.msk [vmem:[%s1652_s5 + $0x8] sm:$0xf] %vm1137_vm7, %v1107_v43  ;;  %v1083_v3 = vmul.f32 %v756_v26, %v1612_v49  ;;  %vm643_vm0 = vweird.f32 %v1781_v22  ;;  %v649_v60 = vand.u32 2147483648, %v1781_v22 }
  0xd7   : > { %v1823_v61 = vadd.f32 1.0, %v1349_v32  ;;  %v1353_v62 = vpop.eup %1352  ;;  %v866_v63 = vmul.f32 %v1347_v35, %v865_v52  ;;  %vm869_vm1 = vweird.f32 %v1347_v35  ;;  %v984_v0 = vmul.f32 %v1351_v58, %v1779_v21  ;;  %v363_v21 = vpop.f32.mrf.mxu2 }
  0xd8   : > { %1356 = vrcp.f32 %v1816_v53  ;;  %v1115_v1 = vpack.c.bf16 %v1083_v3, %v1083_v3  ;;  %vm1827_vm2 = vcmp.eq.f32.partialorder %v992_v42, 8.507059e+37  ;;  %v995_v49 = vor.u32 1.1754944e-38, %v994_v47  ;;  %vm870_vm4 = vmor %vm868_vm12, %vm869_vm1 }
  0xd9   : > { %v639_v2 = vmul.f32 %v1353_v62, %v1781_v22  ;;  %v867_v54 = vadd.f32 %v1347_v35, %v866_v63  ;;  %v985_v4 = vsub.f32 1.0, %v984_v0  ;;  %vm1832_vm3 = vcmp.eq.f32.partialorder %v647_v41, 8.507059e+37 }
  0xda   : > { %v1255_v10 = vmul.f32 -1.442695, %v1809_v46  ;;  %1148 = vst.msk [vmem:[%s1652_s5 + $0x28] sm:$0xf] %vm1137_vm7, %v1115_v1  ;;  %v650_v12 = vor.u32 1.1754944e-38, %v649_v60  ;;  %1358 = vrcp.f32 %v1823_v61  ;;  %vm989_vm5 = vweird.f32 %v1351_v58 }
  0xdb   : > { %v640_v11 = vsub.f32 1.0, %v639_v2  ;;  %v767_v13 = vand.u32 2147483647, %v1816_v53  ;;  %v871_v55 = vsel %vm870_vm4, %v1347_v35, %v867_v54  ;;  %v986_v16 = vmul.f32 %v1351_v58, %v985_v4  ;;  %vm990_vm9 = vmor %vm988_vm15, %vm989_vm5 }
  0xdc   : > { %v1355_v15 = vpop.eup %1354  ;;  %v769_v14 = vand.u32 2147483648, %v1816_v53  ;;  %v876_v17 = vsel %vm1803_vm14, %v875_v40, %v871_v55  ;;  %vm644_vm6 = vweird.f32 %v1353_v62  ;;  %vm763_vm8 = vweird.f32 %v1816_v53 }
  0xdd   : > { %v641_v45 = vmul.f32 %v1353_v62, %v640_v11  ;;  %v1091_v19 = vmul.f32 %v876_v17, %v1709_v6  ;;  %v987_v20 = vadd.f32 %v1351_v58, %v986_v16  ;;  %v1848_v23 = vadd.f32 1.0, %v1355_v15  ;;  %vm645_vm11 = vmor %vm643_vm0, %vm644_vm6  ;;  %v385_v17 = vpop.f32.mrf.mxu3 }
  0xde   : > { %v1357_v7 = vpop.eup %1356  ;;  %1360 = vpow2.f32 %v1255_v10  ;;  %vm1853_vm10 = vcmp.eq.f32.partialorder %v767_v13, 8.507059e+37  ;;  %v887_v27 = vand.u32 2147483647, %v1823_v61  ;;  %v770_v6 = vor.u32 1.1754944e-38, %v769_v14  ;;  %v325_v10 = vpop.f32.mrf.mxu0 }
  0xdf   : > { %v642_v56 = vadd.f32 %v1353_v62, %v641_v45  ;;  %v759_v24 = vmul.f32 %v1357_v7, %v1816_v53  ;;  %v1123_v29 = vpack.c.bf16 %v1091_v19, %v1091_v19  ;;  %v991_v57 = vsel %vm990_vm9, %v1351_v58, %v987_v20  ;;  %v365_v55 = vpop.f32.mrf.mxu2 }
  0xe0   : > { %vm883_vm12 = vweird.f32 %v1823_v61  ;;  %1362 = vrcp.f32 %v1848_v23  ;;  %v1359_v33 = vpop.eup %1358  ;;  %v996_v34 = vsel %vm1827_vm2, %v995_v49, %v991_v57  ;;  %v889_v36 = vand.u32 2147483648, %v1823_v61 }
  0xe1   : > { %v646_v8 = vsel %vm645_vm11, %v1353_v62, %v642_v56  ;;  %v760_v35 = vsub.f32 1.0, %v759_v24  ;;  %1156 = vst.msk [vmem:[%s1652_s5 + $0x48] sm:$0xf] %vm1137_vm7, %v1123_v29  ;;  %v1099_v22 = vmul.f32 %v996_v34, %v1723_v30  ;;  %vm764_vm13 = vweird.f32 %v1357_v7 }
  0xe2   : > { %v651_v38 = vsel %vm1832_vm3, %v650_v12, %v646_v8  ;;  %v879_v39 = vmul.f32 %v1359_v33, %v1823_v61  ;;  %vm884_vm14 = vweird.f32 %v1359_v33  ;;  %v1007_v43 = vand.u32 2147483647, %v1848_v23  ;;  %vm765_vm15 = vmor %vm763_vm8, %vm764_vm13 }
  0xe3   : > { %v1076_v40 = vmul.f32 %v651_v38, %v1726_v31  ;;  %v761_v42 = vmul.f32 %v1357_v7, %v760_v35  ;;  %v1131_v47 = vpack.c.bf16 %v1099_v22, %v1099_v22  ;;  %v1875_v30 = vadd.f32 %v1536_v51, %v1798_v28  ;;  %vm885_vm2 = vmor %vm883_vm12, %vm884_vm14 }
  0xe4   : > { %v1361_v44 = vpop.eup %1360  ;;  %v880_v41 = vsub.f32 1.0, %v879_v39  ;;  %v417_v32 = vmul.f32 %v1531_v50, %v363_v21  ;;  %v1009_v58 = vand.u32 2147483648, %v1848_v23  ;;  %v425_v63 = vmul.f32 %v1531_v50, %v383_v37 }
  0xe5   : > { %v1108_v26 = vpack.c.bf16 %v1076_v40, %v1076_v40  ;;  %v762_v52 = vadd.f32 %v1357_v7, %v761_v42  ;;  %v1879_v3 = vadd.f32 1.0, %v1361_v44  ;;  %1164 = vst.msk [vmem:[%s1652_s5 + $0x68] sm:$0xf] %vm1137_vm7, %v1131_v47  ;;  %v1263_v62 = vmul.f32 -1.442695, %v1875_v30 }
  0xe6   : > { %v1363_v31 = vpop.eup %1362  ;;  %v881_v60 = vmul.f32 %v1359_v33, %v880_v41  ;;  %v1888_v28 = vadd.f32 %v1536_v51, %v417_v32  ;;  %vm1893_vm0 = vcmp.eq.f32.partialorder %v887_v27, 8.507059e+37  ;;  %v890_v2 = vor.u32 1.1754944e-38, %v889_v36 }
  0xe7   : > { %1141 = vst.msk [vmem:[%s1652_s5 + $0xc] sm:$0xf] %vm1137_vm7, %v1108_v26  ;;  %v766_v0 = vsel %vm765_vm15, %v1357_v7, %v762_v52  ;;  %v999_v5 = vmul.f32 %v1363_v31, %v1848_v23  ;;  %1364 = vrcp.f32 %v1879_v3  ;;  %vm1003_vm1 = vweird.f32 %v1848_v23 }
  0xe8   : > { %v771_v53 = vsel %vm1853_vm10, %v770_v6, %v766_v0  ;;  %v882_v49 = vadd.f32 %v1359_v33, %v881_v60  ;;  %vm1906_vm3 = vcmp.eq.f32.partialorder %v1007_v43, 8.507059e+37  ;;  %1366 = vpow2.f32 %v1263_v62  ;;  %v328_v0 = vpop.f32.mrf.mxu0 }
  0xe9   : > { %v1084_v54 = vmul.f32 %v771_v53, %v1748_v48  ;;  %v1000_v4 = vsub.f32 1.0, %v999_v5  ;;  %v1010_v12 = vor.u32 1.1754944e-38, %v1009_v58  ;;  %v1271_v13 = vmul.f32 -1.442695, %v1888_v28  ;;  %v345_v48 = vpop.f32.mrf.mxu1 }
  0xea   : > { %v886_v11 = vsel %vm885_vm2, %v1359_v33, %v882_v49  ;;  %v1912_v15 = vadd.f32 %v1536_v51, %v425_v63  ;;  %vm1004_vm4 = vweird.f32 %v1363_v31  ;;  %v402_v19 = vmul.f32 %v1531_v50, %v325_v10 }
  0xeb   : > { %v1116_v16 = vpack.c.bf16 %v1084_v54, %v1084_v54  ;;  %v891_v61 = vsel %vm1893_vm0, %v890_v2, %v886_v11  ;;  %v1001_v14 = vmul.f32 %v1363_v31, %v1000_v4  ;;  %1368 = vpow2.f32 %v1271_v13  ;;  %vm1005_vm6 = vmor %vm1003_vm1, %vm1004_vm4 }
  0xec   : > { %v1092_v45 = vmul.f32 %v891_v61, %v1753_v59  ;;  %v1279_v7 = vmul.f32 -1.442695, %v1912_v15  ;;  %vm658_vm5 = vweird.f32 %v1879_v3  ;;  %v410_v24 = vmul.f32 %v1531_v50, %v345_v48 }
  0xed   : > { %v1365_v20 = vpop.eup %1364  ;;  %1149 = vst.msk [vmem:[%s1652_s5 + $0x2c] sm:$0xf] %vm1137_vm7, %v1116_v16  ;;  %v1002_v56 = vadd.f32 %v1363_v31, %v1001_v14  ;;  %v418_v25 = vmul.f32 %v1531_v50, %v365_v55  ;;  %v426_v29 = vmul.f32 %v1531_v50, %v385_v17  ;;  %v1929_v21 = vadd.f32 %v1536_v51, %v402_v19 }
  0xee   : > { %v1124_v27 = vpack.c.bf16 %v1092_v45, %v1092_v45  ;;  %v654_v59 = vmul.f32 %v1365_v20, %v1879_v3  ;;  %1370 = vpow2.f32 %v1279_v7  ;;  %v1367_v57 = vpop.eup %1366  ;;  %v1932_v33 = vadd.f32 %v1536_v51, %v410_v24 }
  0xef   : > { %v1006_v6 = vsel %vm1005_vm6, %v1363_v31, %v1002_v56  ;;  %v1935_v34 = vadd.f32 %v1536_v51, %v418_v25  ;;  %v662_v35 = vand.u32 2147483647, %v1879_v3  ;;  %v1942_v36 = vadd.f32 1.0, %v1367_v57 }
  0xf0   : > { %1157 = vst.msk [vmem:[%s1652_s5 + $0x4c] sm:$0xf] %vm1137_vm7, %v1124_v27  ;;  %v1011_v23 = vsel %vm1906_vm3, %v1010_v12, %v1006_v6  ;;  %v655_v8 = vsub.f32 1.0, %v654_v59  ;;  %v664_v22 = vand.u32 2147483648, %v1879_v3  ;;  %v1256_v38 = vmul.f32 -1.442695, %v1929_v21  ;;  %v330_v57 = vpop.f32.mrf.mxu0 }
  0xf1   : > { %v1100_v37 = vmul.f32 %v1011_v23, %v1777_v18  ;;  %v1264_v39 = vmul.f32 -1.442695, %v1932_v33  ;;  %v1369_v40 = vpop.eup %1368  ;;  %vm659_vm8 = vweird.f32 %v1365_v20  ;;  %1372 = vrcp.f32 %v1942_v36  ;;  %v348_v16 = vpop.f32.mrf.mxu1 }
  0xf2   : > { %v656_v42 = vmul.f32 %v1365_v20, %v655_v8  ;;  %v1950_v43 = vadd.f32 %v1536_v51, %v426_v29  ;;  %v1952_v47 = vadd.f32 1.0, %v1369_v40  ;;  %1374 = vpow2.f32 %v1256_v38  ;;  %vm660_vm9 = vmor %vm658_vm5, %vm659_vm8 }
  0xf3   : > { %v1132_v44 = vpack.c.bf16 %v1100_v37, %v1100_v37  ;;  %v1272_v18 = vmul.f32 -1.442695, %v1935_v34  ;;  %1376 = vpow2.f32 %v1264_v39  ;;  %v665_v26 = vor.u32 1.1754944e-38, %v664_v22 }
  0xf4   : > { %v1371_v41 = vpop.eup %1370  ;;  %v657_v32 = vadd.f32 %v1365_v20, %v656_v42  ;;  %v782_v52 = vand.u32 2147483647, %v1942_v36  ;;  %v784_v58 = vand.u32 2147483648, %v1942_v36  ;;  %1378 = vrcp.f32 %v1952_v47 }
  0xf5   : > { %1165 = vst.msk [vmem:[%s1652_s5 + $0x6c] sm:$0xf] %vm1137_vm7, %v1132_v44  ;;  %vm663_vm10 = vcmp.eq.f32.partialorder %v662_v35, 8.507059e+37  ;;  %v1962_v60 = vadd.f32 1.0, %v1371_v41  ;;  %v1280_v62 = vmul.f32 -1.442695, %v1950_v43  ;;  %1380 = vpow2.f32 %v1272_v18 }
  0xf6   : > { %v661_v31 = vsel %vm660_vm9, %v1365_v20, %v657_v32  ;;  %v902_v5 = vand.u32 2147483647, %v1952_v47  ;;  %v904_v53 = vand.u32 2147483648, %v1952_v47  ;;  %vm778_vm11 = vweird.f32 %v1942_v36 }
  0xf7   : > { %v666_v63 = vsel %vm663_vm10, %v665_v26, %v661_v31  ;;  %v1373_v1 = vpop.eup %1372  ;;  %1382 = vrcp.f32 %v1962_v60  ;;  %vm1971_vm12 = vcmp.eq.f32.partialorder %v782_v52, 8.507059e+37  ;;  %v785_v4 = vor.u32 1.1754944e-38, %v784_v58 }
  0xf8   : > { %v1077_v3 = vmul.f32 %v666_v63, %v1809_v46  ;;  %v1375_v49 = vpop.eup %1374  ;;  %v774_v2 = vmul.f32 %v1373_v1, %v1942_v36  ;;  %1384 = vpow2.f32 %v1280_v62  ;;  %v403_v11 = vmul.f32 %v1531_v50, %v328_v0 }
  0xf9   : > { %v1377_v9 = vpop.eup %1376  ;;  %v1975_v46 = vadd.f32 1.0, %v1375_v49  ;;  %vm898_vm13 = vweird.f32 %v1952_v47  ;;  %v1022_v48 = vand.u32 2147483647, %v1962_v60  ;;  %vm1985_vm14 = vcmp.eq.f32.partialorder %v902_v5, 8.507059e+37 }
  0xfa   : > { %v1109_v10 = vpack.c.bf16 %v1077_v3, %v1077_v3  ;;  %v1379_v12 = vpop.eup %1378  ;;  %v775_v13 = vsub.f32 1.0, %v774_v2  ;;  %v1980_v55 = vadd.f32 1.0, %v1377_v9  ;;  %v905_v17 = vor.u32 1.1754944e-38, %v904_v53  ;;  %v368_v53 = vpop.f32.mrf.mxu2 }
  0xfb   : > { %v894_v61 = vmul.f32 %v1379_v12, %v1952_v47  ;;  %v1024_v45 = vand.u32 2147483648, %v1962_v60  ;;  %1386 = vrcp.f32 %v1975_v46  ;;  %v1381_v7 = vpop.eup %1380  ;;  %vm779_vm15 = vweird.f32 %v1373_v1 }
  0xfc   : > { %1142 = vst.msk [vmem:[%s1652_s5 + $0x10] sm:$0xf] %vm1137_vm7, %v1109_v10  ;;  %v776_v19 = vmul.f32 %v1373_v1, %v775_v13  ;;  %vm1018_vm0 = vweird.f32 %v1962_v60  ;;  %1388 = vrcp.f32 %v1980_v55  ;;  %v679_v24 = vand.u32 2147483648, %v1975_v46  ;;  %vm780_vm2 = vmor %vm778_vm11, %vm779_vm15 }
  0xfd   : > { %v1383_v20 = vpop.eup %1382  ;;  %v895_v56 = vsub.f32 1.0, %v894_v61  ;;  %v1995_v25 = vadd.f32 %v1536_v51, %v403_v11  ;;  %v411_v27 = vmul.f32 %v1531_v50, %v348_v16  ;;  %vm1999_vm1 = vcmp.eq.f32.partialorder %v1022_v48, 8.507059e+37 }
  0xfe   : > { %v777_v59 = vadd.f32 %v1373_v1, %v776_v19  ;;  %v1014_v29 = vmul.f32 %v1383_v20, %v1962_v60  ;;  %v677_v6 = vand.u32 2147483647, %v1975_v46  ;;  %v1385_v23 = vpop.eup %1384  ;;  %vm899_vm3 = vweird.f32 %v1379_v12 }
  0xff   : > { %v896_v8 = vmul.f32 %v1379_v12, %v895_v56  ;;  %v1025_v35 = vor.u32 1.1754944e-38, %v1024_v45  ;;  %v797_v51 = vand.u32 2147483647, %v1980_v55  ;;  %vm673_vm4 = vweird.f32 %v1975_v46  ;;  %vm900_vm8 = vmor %vm898_vm13, %vm899_vm3  ;;  %v388_v56 = vpop.f32.mrf.mxu3 }
 0x100   : > { %v781_v37 = vsel %vm780_vm2, %v1373_v1, %v777_v59  ;;  %v1015_v50 = vsub.f32 1.0, %v1014_v29  ;;  %v799_v22 = vand.u32 2147483648, %v1980_v55  ;;  %v2009_v38 = vadd.f32 1.0, %v1381_v7 }
 0x101   : > { %v1387_v39 = vpop.eup %1386  ;;  %v786_v40 = vsel %vm1971_vm12, %v785_v4, %v781_v37  ;;  %v897_v42 = vadd.f32 %v1379_v12, %v896_v8  ;;  %vm1019_vm5 = vweird.f32 %v1383_v20  ;;  %v680_v36 = vor.u32 1.1754944e-38, %v679_v24  ;;  %v1427_v8 = vld [vmem:[%s2239_s2] ss:$0 sm:$0xff] }
 0x102   : > { %vm793_vm6 = vweird.f32 %v1980_v55  ;;  %v1389_v44 = vpop.eup %1388  ;;  %v1085_v18 = vmul.f32 %v786_v40, %v1875_v30  ;;  %v1016_v41 = vmul.f32 %v1383_v20, %v1015_v50  ;;  %v669_v32 = vmul.f32 %v1387_v39, %v1975_v46  ;;  %vm1020_vm11 = vmor %vm1018_vm0, %vm1019_vm5  ;;  %v350_v50 = vpop.f32.mrf.mxu1 }
 0x103   : > { %vm2019_vm9 = vcmp.eq.f32.partialorder %v677_v6, 8.507059e+37  ;;  %v2023_v52 = vadd.f32 1.0, %v1385_v23  ;;  %v901_v58 = vsel %vm900_vm8, %v1379_v12, %v897_v42  ;;  %v789_v31 = vmul.f32 %v1389_v44, %v1980_v55  ;;  %v2048_v12 = vld [vmem:[%s2240_s3] ss:$0 sm:$0xff] }
 0x104   : > { %vm2026_vm10 = vcmp.eq.f32.partialorder %v797_v51, 8.507059e+37  ;;  %1390 = vrcp.f32 %v2009_v38  ;;  %v1117_v30 = vpack.c.bf16 %v1085_v18, %v1085_v18  ;;  %v906_v47 = vsel %vm1985_vm14, %v905_v17, %v901_v58 }
 0x105   : > { %v1017_v63 = vadd.f32 %v1383_v20, %v1016_v41  ;;  %v670_v0 = vsub.f32 1.0, %v669_v32  ;;  %v1093_v1 = vmul.f32 %v906_v47, %v1888_v28  ;;  %vm674_vm12 = vweird.f32 %v1387_v39 }
 0x106   : > { %v790_v3 = vsub.f32 1.0, %v789_v31  ;;  %v1257_v5 = vmul.f32 -1.442695, %v1995_v25  ;;  %1150 = vst.msk [vmem:[%s1652_s5 + $0x30] sm:$0xf] %vm1137_vm7, %v1117_v30  ;;  %v919_v54 = vand.u32 2147483648, %v2009_v38  ;;  %1392 = vrcp.f32 %v2023_v52  ;;  %vm675_vm14 = vmor %vm673_vm4, %vm674_vm12 }
 0x107   : > { %v1021_v49 = vsel %vm1020_vm11, %v1383_v20, %v1017_v63  ;;  %v671_v2 = vmul.f32 %v1387_v39, %v670_v0  ;;  %v1125_v4 = vpack.c.bf16 %v1093_v1, %v1093_v1  ;;  %vm794_vm13 = vweird.f32 %v1389_v44 }
 0x108   : > { %v1026_v28 = vsel %vm1999_vm1, %v1025_v35, %v1021_v49  ;;  %v791_v60 = vmul.f32 %v1389_v44, %v790_v3  ;;  %v800_v11 = vor.u32 1.1754944e-38, %v799_v22  ;;  %v2051_v13 = vadd.f32 %v2048_v12, %v411_v27  ;;  %vm795_vm0 = vmor %vm793_vm6, %vm794_vm13 }
 0x109   : > { %v1101_v9 = vmul.f32 %v1026_v28, %v1912_v15  ;;  %v672_v10 = vadd.f32 %v1387_v39, %v671_v2  ;;  %1158 = vst.msk [vmem:[%s1652_s5 + $0x50] sm:$0xf] %vm1137_vm7, %v1125_v4  ;;  %vm913_vm15 = vweird.f32 %v2009_v38  ;;  %v917_v15 = vand.u32 2147483647, %v2009_v38 }
 0x10a   : > { %v1391_v48 = vpop.eup %1390  ;;  %v792_v16 = vadd.f32 %v1389_v44, %v791_v60  ;;  %1394 = vpow2.f32 %v1257_v5  ;;  %v920_v45 = vor.u32 1.1754944e-38, %v919_v54  ;;  %v1037_v19 = vand.u32 2147483647, %v2023_v52 }
 0x10b   : > { %v1133_v61 = vpack.c.bf16 %v1101_v9, %v1101_v9  ;;  %v676_v14 = vsel %vm675_vm14, %v1387_v39, %v672_v10  ;;  %v909_v17 = vmul.f32 %v1391_v48, %v2009_v38  ;;  %v1039_v20 = vand.u32 2147483648, %v2023_v52 }
 0x10c   : > { %v681_v46 = vsel %vm2019_vm9, %v680_v36, %v676_v14  ;;  %v796_v7 = vsel %vm795_vm0, %v1389_v44, %v792_v16  ;;  %v1393_v24 = vpop.eup %1392  ;;  %v1265_v29 = vmul.f32 -1.442695, %v2051_v13  ;;  %vm914_vm1 = vweird.f32 %v1391_v48  ;;  %v370_v36 = vpop.f32.mrf.mxu2 }
 0x10d   : > { %1166 = vst.msk [vmem:[%s1652_s5 + $0x70] sm:$0xf] %vm1137_vm7, %v1133_v61  ;;  %v1078_v27 = vmul.f32 %v681_v46, %v1929_v21  ;;  %v801_v55 = vsel %vm2026_vm10, %v800_v11, %v796_v7  ;;  %v910_v59 = vsub.f32 1.0, %v909_v17  ;;  %v1029_v23 = vmul.f32 %v1393_v24, %v2023_v52  ;;  %vm915_vm3 = vmor %vm913_vm15, %vm914_vm1 }
 0x10e   : > { %v1086_v6 = vmul.f32 %v801_v55, %v1932_v33  ;;  %v419_v35 = vmul.f32 %v1427_v8, %v368_v53  ;;  %1396 = vpow2.f32 %v1265_v29  ;;  %v427_v37 = vmul.f32 %v1427_v8, %v388_v56 }
 0x10f   : > { %v1110_v51 = vpack.c.bf16 %v1078_v27, %v1078_v27  ;;  %v911_v21 = vmul.f32 %v1391_v48, %v910_v59  ;;  %v1030_v40 = vsub.f32 1.0, %v1029_v23  ;;  %v404_v42 = vmul.f32 %v1427_v8, %v330_v57 }
 0x110   : > { %v1395_v22 = vpop.eup %1394  ;;  %v1118_v39 = vpack.c.bf16 %v1086_v6, %v1086_v6  ;;  %v2080_v33 = vadd.f32 %v2048_v12, %v419_v35  ;;  %vm1034_vm2 = vweird.f32 %v1393_v24  ;;  %v2087_v41 = vadd.f32 %v2048_v12, %v427_v37 }
 0x111   : > { %1143 = vst.msk [vmem:[%s1652_s5 + $0x14] sm:$0xf] %vm1137_vm7, %v1110_v51  ;;  %v912_v44 = vadd.f32 %v1391_v48, %v911_v21  ;;  %v2084_v18 = vadd.f32 1.0, %v1395_v22  ;;  %v1031_v32 = vmul.f32 %v1393_v24, %v1030_v40  ;;  %v2096_v58 = vadd.f32 %v2048_v12, %v404_v42 }
 0x112   : > { %1151 = vst.msk [vmem:[%s1652_s5 + $0x34] sm:$0xf] %vm1137_vm7, %v1118_v39  ;;  %v1273_v26 = vmul.f32 -1.442695, %v2080_v33  ;;  %v412_v31 = vmul.f32 %v1427_v8, %v350_v50  ;;  %vm918_vm4 = vcmp.eq.f32.partialorder %v917_v15, 8.507059e+37  ;;  %v420_v30 = vmul.f32 %v1427_v8, %v370_v36 }
 0x113   : > { %v916_v62 = vsel %vm915_vm3, %v1391_v48, %v912_v44  ;;  %1398 = vrcp.f32 %v2084_v18  ;;  %v1032_v63 = vadd.f32 %v1393_v24, %v1031_v32  ;;  %vm1033_vm5 = vweird.f32 %v2023_v52  ;;  %v390_v52 = vpop.f32.mrf.mxu3 }
 0x114   : > { %v921_v47 = vsel %vm918_vm4, %v920_v45, %v916_v62  ;;  %1400 = vpow2.f32 %v1273_v26  ;;  %v1397_v0 = vpop.eup %1396  ;;  %vm1035_vm6 = vmor %vm1033_vm5, %vm1034_vm2  ;;  %v1040_v1 = vor.u32 1.1754944e-38, %v1039_v20  ;;  %v1281_v3 = vmul.f32 -1.442695, %v2087_v41 }
 0x115   : > { %v1094_v38 = vmul.f32 %v921_v47, %v1935_v34  ;;  %v1258_v5 = vmul.f32 -1.442695, %v2096_v58  ;;  %v1036_v53 = vsel %vm1035_vm6, %v1393_v24, %v1032_v63  ;;  %vm1038_vm8 = vcmp.eq.f32.partialorder %v1037_v19, 8.507059e+37 }
 0x116   : > { %v2104_v49 = vadd.f32 1.0, %v1397_v0  ;;  %v2107_v2 = vadd.f32 %v2048_v12, %v412_v31  ;;  %v1041_v4 = vsel %vm1038_vm8, %v1040_v1, %v1036_v53  ;;  %1402 = vpow2.f32 %v1281_v3 }
 0x117   : > { %v1126_v54 = vpack.c.bf16 %v1094_v38, %v1094_v38  ;;  %v2110_v34 = vadd.f32 %v2048_v12, %v420_v30  ;;  %v1102_v28 = vmul.f32 %v1041_v4, %v1950_v43  ;;  %v428_v10 = vmul.f32 %v1427_v8, %v390_v52 }
 0x118   : > { %1404 = vrcp.f32 %v2104_v49  ;;  %v1266_v9 = vmul.f32 -1.442695, %v2107_v2  ;;  %v692_v15 = vand.u32 2147483647, %v2084_v18  ;;  %v694_v61 = vand.u32 2147483648, %v2084_v18 }
 0x119   : > { %v1399_v60 = vpop.eup %1398  ;;  %1159 = vst.msk [vmem:[%s1652_s5 + $0x54] sm:$0xf] %vm1137_vm7, %v1126_v54  ;;  %1406 = vpow2.f32 %v1258_v5  ;;  %v1134_v48 = vpack.c.bf16 %v1102_v28, %v1102_v28  ;;  %v1274_v43 = vmul.f32 -1.442695, %v2110_v34  ;;  %v2126_v45 = vadd.f32 %v2048_v12, %v428_v10 }
 0x11a   : > { %v1401_v11 = vpop.eup %1400  ;;  %v684_v16 = vmul.f32 %v1399_v60, %v2084_v18  ;;  %1408 = vpow2.f32 %v1266_v9  ;;  %vm688_vm9 = vweird.f32 %v2084_v18  ;;  %vm689_vm10 = vweird.f32 %v1399_v60 }
 0x11b   : > { %v2120_v14 = vadd.f32 1.0, %v1401_v11  ;;  %1167 = vst.msk [vmem:[%s1652_s5 + $0x74] sm:$0xf] %vm1137_vm7, %v1134_v48  ;;  %v1282_v56 = vmul.f32 -1.442695, %v2126_v45  ;;  %vm2133_vm11 = vcmp.eq.f32.partialorder %v692_v15, 8.507059e+37  ;;  %vm808_vm12 = vweird.f32 %v2104_v49  ;;  %vm690_vm13 = vmor %vm688_vm9, %vm689_vm10 }
 0x11c   : > { %v685_v17 = vsub.f32 1.0, %v684_v16  ;;  %v1403_v46 = vpop.eup %1402  ;;  %v695_v55 = vor.u32 1.1754944e-38, %v694_v61  ;;  %v812_v29 = vand.u32 2147483647, %v2104_v49  ;;  %v814_v23 = vand.u32 2147483648, %v2104_v49 }
 0x11d   : > { %1410 = vrcp.f32 %v2120_v14  ;;  %v2130_v20 = vadd.f32 1.0, %v1403_v46  ;;  %v932_v8 = vand.u32 2147483647, %v2120_v14  ;;  %v934_v21 = vand.u32 2147483648, %v2120_v14 }
 0x11e   : > { %v1405_v7 = vpop.eup %1404  ;;  %v686_v19 = vmul.f32 %v1399_v60, %v685_v17  ;;  %1412 = vpow2.f32 %v1274_v43  ;;  %vm2154_vm15 = vcmp.eq.f32.partialorder %v812_v29, 8.507059e+37  ;;  %v815_v26 = vor.u32 1.1754944e-38, %v814_v23 }
 0x11f   : > { %v1407_v24 = vpop.eup %1406  ;;  %v804_v12 = vmul.f32 %v1405_v7, %v2104_v49  ;;  %1414 = vrcp.f32 %v2130_v20  ;;  %vm809_vm14 = vweird.f32 %v1405_v7  ;;  %v1052_v44 = vand.u32 2147483647, %v2130_v20 }
 0x120   : > { %v687_v59 = vadd.f32 %v1399_v60, %v686_v19  ;;  %v1409_v57 = vpop.eup %1408  ;;  %v2145_v35 = vadd.f32 1.0, %v1407_v24  ;;  %1416 = vpow2.f32 %v1282_v56  ;;  %v1054_v31 = vand.u32 2147483648, %v2130_v20  ;;  %vm810_vm0 = vmor %vm808_vm12, %vm809_vm14 }
 0x121   : > { %v805_v6 = vsub.f32 1.0, %v804_v12  ;;  %v2148_v37 = vadd.f32 1.0, %v1409_v57  ;;  %vm928_vm1 = vweird.f32 %v2120_v14  ;;  %vm2165_vm2 = vcmp.eq.f32.partialorder %v932_v8, 8.507059e+37 }
 0x122   : > { %v691_v51 = vsel %vm690_vm13, %v1399_v60, %v687_v59  ;;  %1418 = vrcp.f32 %v2145_v35  ;;  %v935_v0 = vor.u32 1.1754944e-38, %v934_v21  ;;  %vm1048_vm3 = vweird.f32 %v2130_v20 }
 0x123   : > { %v1411_v50 = vpop.eup %1410  ;;  %v696_v22 = vsel %vm2133_vm11, %v695_v55, %v691_v51  ;;  %v806_v39 = vmul.f32 %v1405_v7, %v805_v6  ;;  %1420 = vrcp.f32 %v2148_v37  ;;  %vm2175_vm5 = vcmp.eq.f32.partialorder %v1052_v44, 8.507059e+37 }
 0x124   : > { %v1079_v40 = vmul.f32 %v696_v22, %v1995_v25  ;;  %v924_v36 = vmul.f32 %v1411_v50, %v2120_v14  ;;  %v1413_v18 = vpop.eup %1412  ;;  %vm929_vm4 = vweird.f32 %v1411_v50  ;;  %v1055_v4 = vor.u32 1.1754944e-38, %v1054_v31 }
 0x125   : > { %v807_v32 = vadd.f32 %v1405_v7, %v806_v39  ;;  %v1415_v62 = vpop.eup %1414  ;;  %v2180_v28 = vadd.f32 1.0, %v1413_v18  ;;  %vm703_vm8 = vweird.f32 %v2145_v35  ;;  %vm930_vm9 = vmor %vm928_vm1, %vm929_vm4  ;;  %v707_v61 = vand.u32 2147483647, %v2145_v35 }
 0x126   : > { %v1111_v30 = vpack.c.bf16 %v1079_v40, %v1079_v40  ;;  %v925_v25 = vsub.f32 1.0, %v924_v36  ;;  %v1044_v38 = vmul.f32 %v1415_v62, %v2130_v20  ;;  %v1417_v1 = vpop.eup %1416  ;;  %vm1049_vm6 = vweird.f32 %v1415_v62 }
 0x127   : > { %v811_v63 = vsel %vm810_vm0, %v1405_v7, %v807_v32  ;;  %1422 = vrcp.f32 %v2180_v28  ;;  %v709_v14 = vand.u32 2147483648, %v2145_v35  ;;  %v827_v7 = vand.u32 2147483647, %v2148_v37  ;;  %vm1050_vm10 = vmor %vm1048_vm3, %vm1049_vm6 }
 0x128   : > { %1144 = vst.msk [vmem:[%s1652_s5 + $0x18] sm:$0xf] %vm1137_vm7, %v1111_v30  ;;  %v816_v3 = vsel %vm2154_vm15, %v815_v26, %v811_v63  ;;  %v926_v5 = vmul.f32 %v1411_v50, %v925_v25  ;;  %v1419_v49 = vpop.eup %1418  ;;  %v1045_v54 = vsub.f32 1.0, %v1044_v38  ;;  %v829_v55 = vand.u32 2147483648, %v2148_v37 }
 0x129   : > { %v1087_v52 = vmul.f32 %v816_v3, %v2051_v13  ;;  %v699_v9 = vmul.f32 %v1419_v49, %v2145_v35  ;;  %v1421_v10 = vpop.eup %1420  ;;  %v2187_v13 = vadd.f32 1.0, %v1417_v1  ;;  %vm704_vm11 = vweird.f32 %v1419_v49 }
 0x12a   : > { %v927_v60 = vadd.f32 %v1411_v50, %v926_v5  ;;  %v1046_v48 = vmul.f32 %v1415_v62, %v1045_v54  ;;  %v819_v43 = vmul.f32 %v1421_v10, %v2148_v37  ;;  %vm824_vm12 = vweird.f32 %v1421_v10  ;;  %vm705_vm13 = vmor %vm703_vm8, %vm704_vm11 }
 0x12b   : > { %v1119_v11 = vpack.c.bf16 %v1087_v52, %v1087_v52  ;;  %v700_v15 = vsub.f32 1.0, %v699_v9  ;;  %1424 = vrcp.f32 %v2187_v13  ;;  %v710_v6 = vor.u32 1.1754944e-38, %v709_v14 }
 0x12c   : > { %v931_v16 = vsel %vm930_vm9, %v1411_v50, %v927_v60  ;;  %v1047_v46 = vadd.f32 %v1415_v62, %v1046_v48  ;;  %v820_v24 = vsub.f32 1.0, %v819_v43  ;;  %vm823_vm14 = vweird.f32 %v2148_v37 }
 0x12d   : > { %1152 = vst.msk [vmem:[%s1652_s5 + $0x38] sm:$0xf] %vm1137_vm7, %v1119_v11  ;;  %v936_v17 = vsel %vm2165_vm2, %v935_v0, %v931_v16  ;;  %v701_v56 = vmul.f32 %v1419_v49, %v700_v15  ;;  %v1423_v57 = vpop.eup %1422  ;;  %vm708_vm15 = vcmp.eq.f32.partialorder %v707_v61, 8.507059e+37  ;;  %vm825_vm0 = vmor %vm823_vm14, %vm824_vm12  ;;  %vm828_vm1 = vcmp.eq.f32.partialorder %v827_v7, 8.507059e+37 }
 0x12e   : > { %v1095_v19 = vmul.f32 %v936_v17, %v2080_v33  ;;  %v1051_v27 = vsel %vm1050_vm10, %v1415_v62, %v1047_v46  ;;  %v821_v33 = vmul.f32 %v1421_v10, %v820_v24  ;;  %v939_v51 = vmul.f32 %v1423_v57, %v2180_v28 }
 0x12f   : > { %v1056_v59 = vsel %vm2175_vm5, %v1055_v4, %v1051_v27  ;;  %v702_v29 = vadd.f32 %v1419_v49, %v701_v56  ;;  %vm944_vm2 = vweird.f32 %v1423_v57  ;;  %v947_v42 = vand.u32 2147483647, %v2180_v28 }
 0x130   : > { %v1127_v12 = vpack.c.bf16 %v1095_v19, %v1095_v19  ;;  %v1103_v20 = vmul.f32 %v1056_v59, %v2087_v41  ;;  %v822_v8 = vadd.f32 %v1421_v10, %v821_v33  ;;  %v830_v41 = vor.u32 1.1754944e-38, %v829_v55 }
 0x131   : > { %v706_v23 = vsel %vm705_vm13, %v1419_v49, %v702_v29  ;;  %v940_v39 = vsub.f32 1.0, %v939_v51  ;;  %v1425_v40 = vpop.eup %1424  ;;  %v949_v36 = vand.u32 2147483648, %v2180_v28  ;;  %vm943_vm3 = vweird.f32 %v2180_v28 }
 0x132   : > { %1160 = vst.msk [vmem:[%s1652_s5 + $0x58] sm:$0xf] %vm1137_vm7, %v1127_v12  ;;  %v1135_v21 = vpack.c.bf16 %v1103_v20, %v1103_v20  ;;  %v711_v50 = vsel %vm708_vm15, %v710_v6, %v706_v23  ;;  %v826_v22 = vsel %vm825_vm0, %v1421_v10, %v822_v8  ;;  %v1059_v26 = vmul.f32 %v1425_v40, %v2187_v13  ;;  %vm945_vm4 = vmor %vm943_vm3, %vm944_vm2 }
 0x133   : > { %v1080_v35 = vmul.f32 %v711_v50, %v2096_v58  ;;  %v831_v37 = vsel %vm828_vm1, %v830_v41, %v826_v22  ;;  %v941_v32 = vmul.f32 %v1423_v57, %v940_v39  ;;  %vm948_vm5 = vcmp.eq.f32.partialorder %v947_v42, 8.507059e+37 }
 0x134   : > { %1168 = vst.msk [vmem:[%s1652_s5 + $0x78] sm:$0xf] %vm1137_vm7, %v1135_v21  ;;  %v1088_v18 = vmul.f32 %v831_v37, %v2107_v2  ;;  %v1060_v62 = vsub.f32 1.0, %v1059_v26  ;;  %v950_v30 = vor.u32 1.1754944e-38, %v949_v36  ;;  %v1069_v25 = vand.u32 2147483648, %v2187_v13 }
 0x135   : > { %v1112_v44 = vpack.c.bf16 %v1080_v35, %v1080_v35  ;;  %v942_v31 = vadd.f32 %v1423_v57, %v941_v32  ;;  %vm1064_vm6 = vweird.f32 %v1425_v40  ;;  %v1067_v63 = vand.u32 2147483647, %v2187_v13 }
 0x136   : > { %v1120_v58 = vpack.c.bf16 %v1088_v18, %v1088_v18  ;;  %v1061_v2 = vmul.f32 %v1425_v40, %v1060_v62  ;;  %vm1063_vm8 = vweird.f32 %v2187_v13  ;;  %v1070_v3 = vor.u32 1.1754944e-38, %v1069_v25 }
 0x137   : > { %1145 = vst.msk [vmem:[%s1652_s5 + $0x1c] sm:$0xf] %vm1137_vm7, %v1112_v44  ;;  %v946_v47 = vsel %vm945_vm4, %v1423_v57, %v942_v31  ;;  %vm1065_vm9 = vmor %vm1063_vm8, %vm1064_vm6  ;;  %vm1068_vm10 = vcmp.eq.f32.partialorder %v1067_v63, 8.507059e+37 }
 0x138   : > { %1153 = vst.msk [vmem:[%s1652_s5 + $0x3c] sm:$0xf] %vm1137_vm7, %v1120_v58  ;;  %v951_v0 = vsel %vm948_vm5, %v950_v30, %v946_v47  ;;  %v1062_v1 = vadd.f32 %v1425_v40, %v1061_v2 }
 0x139   : > { %v1096_v38 = vmul.f32 %v951_v0, %v2110_v34 }
 0x13a   : > { %v1066_v53 = vsel %vm1065_vm9, %v1425_v40, %v1062_v1 }
 0x13b   : > { %v1128_v5 = vpack.c.bf16 %v1096_v38, %v1096_v38  ;;  %v1071_v49 = vsel %vm1068_vm10, %v1070_v3, %v1066_v53 }
 0x13c   : > { %v1104_v52 = vmul.f32 %v1071_v49, %v2126_v45 }
 0x13d   : > { %1161 = vst.msk [vmem:[%s1652_s5 + $0x5c] sm:$0xf] %vm1137_vm7, %v1128_v5 }
 0x13e   : > { %v1136_v54 = vpack.c.bf16 %v1104_v52, %v1104_v52 }
 0x140   : > { %1169 = vst.msk [vmem:[%s1652_s5 + $0x7c] sm:$0xf] %vm1137_vm7, %v1136_v54 }
 0x141 PF: > { %s14_s15 = sadd.s32 1, %s1434_s15  }
 0x142   : > { %p11_p4 = scmp.ge.s32.totalorder %s14_s15, 4  }
 0x144   :  { %13 = sbr.rel (!%p11_p4) target bundleno = 1 (0x1), region = 66 }

</bundles_post_ra>
